<compile_context>
chip_gen: v7x
topology: tpu7x:2x2x1
jax: 0.10.0
libtpu: 0.0.40
codegen_flags: <defaults>
</compile_context>

<pallas_src>
import math

import jax
import jax.numpy as jnp
from jax.experimental import pallas as pl
from jax.experimental.pallas import tpu as pltpu

INPUT_DIMENSIONS = 4
HIDDEN = 12
OUTPUT_DIMENSIONS = 2

_LANE = 128
# Largest per-step batch tile (lanes).  f32 input block = 4*128K*4 = 2 MiB,
# output block = 1 MiB; double-buffered that's ~6 MiB of VMEM (fine even on
# v7x's smaller budget) while each step carries ~3 MiB of HBM traffic, which
# amortizes the ~0.35 us/step pipeline overhead and sits near the HBM roofline.
_MAX_TILE = 128 * 1024


def _mlp_kernel(x_ref, w1_ref, b1_ref, w2_ref, b2_ref, w3_ref, b3_ref, o_ref):
    # Transposed layout: activations are (features, batch_tile).
    xT = x_ref[...]                                                    # (4, TB)
    h1 = jnp.dot(w1_ref[...], xT, preferred_element_type=jnp.float32) + b1_ref[...]
    h1 = jnp.maximum(h1, 0.0)                                          # (12, TB)
    h2 = jnp.dot(w2_ref[...], h1, preferred_element_type=jnp.float32) + b2_ref[...]
    h2 = jnp.maximum(h2, 0.0)                                          # (12, TB)
    o_ref[...] = (
        jnp.dot(w3_ref[...], h2, preferred_element_type=jnp.float32) + b3_ref[...]
    )                                                                  # (2, TB)


def _round_up(n, m):
    return ((n + m - 1) // m) * m


def _pick_tiling(batch):
    """Return (tile_batch, padded_batch, num_steps).

    * batch is padded only to a multiple of 128 (lane width); any further
      padding (to tile * steps) is bounded by <128 lanes per grid step.
    * the tile is as large as possible (<= _MAX_TILE) to amortize the
      ~0.35 us per-step pipeline overhead.
    * whenever the 128-padded batch is >= 256 lanes we use >= 2 grid steps so
      the "parallel" grid axis can be sharded across the two v7x TensorCores.
    """
    padded128 = _round_up(max(batch, 1), _LANE)
    min_steps = 2 if padded128 >= 2 * _LANE else 1
    n_steps = max(min_steps, -(-padded128 // _MAX_TILE))
    tile = _round_up(-(-padded128 // n_steps), _LANE)
    padded = tile * n_steps
    return tile, padded, n_steps


@jax.jit
def dqn_network_forward_fm(xT, params):
    """Feature-major forward pass (preferred entry point).

    xT: (4, batch) float32 activations (feature-major).
    returns: (2, batch) float32 Q-values (feature-major).

    Keeping activations feature-major end-to-end avoids two full HBM
    read+write transpose passes around this memory-bound kernel.
    """
    batch = xT.shape[1]
    tb, padded, _ = _pick_tiling(batch)

    xT = xT.astype(jnp.float32)
    if padded != batch:
        xT = jnp.pad(xT, ((0, 0), (0, padded - batch)))
    grid = (padded // tb,)

    w1, b1 = params["w1"], params["b1"]
    w2, b2 = params["w2"], params["b2"]
    w3, b3 = params["w3"], params["b3"]

    # Full-array blocks with constant index_map -> the tiny weights/biases are
    # DMA'd once and stay VMEM-resident across grid steps.
    def const_spec(a):
        return pl.BlockSpec(a.shape, lambda i: (0, 0))

    weight_bytes = sum(
        int(a.size) * a.dtype.itemsize for a in (w1, b1, w2, b2, w3, b3)
    )
    cost = pl.CostEstimate(
        flops=2 * padded * (INPUT_DIMENSIONS * HIDDEN
                            + HIDDEN * HIDDEN
                            + HIDDEN * OUTPUT_DIMENSIONS),
        transcendentals=0,
        bytes_accessed=padded * (INPUT_DIMENSIONS + OUTPUT_DIMENSIONS) * 4
        + weight_bytes,
    )

    outT = pl.pallas_call(
        _mlp_kernel,
        out_shape=jax.ShapeDtypeStruct((OUTPUT_DIMENSIONS, padded), jnp.float32),
        grid=grid,
        in_specs=[
            pl.BlockSpec((INPUT_DIMENSIONS, tb), lambda i: (0, i)),
            const_spec(w1), const_spec(b1),
            const_spec(w2), const_spec(b2),
            const_spec(w3), const_spec(b3),
        ],
        out_specs=pl.BlockSpec((OUTPUT_DIMENSIONS, tb), lambda i: (0, i)),
        compiler_params=pltpu.CompilerParams(
            dimension_semantics=("parallel",),
            vmem_limit_bytes=32 * 1024 * 1024,
        ),
        cost_estimate=cost,
    )(xT, w1, b1, w2, b2, w3, b3)

    return outT[:, :batch]


@jax.jit
def dqn_network_forward(x, params):
    """Drop-in equivalent of Network.forward: x (batch, 4) -> (batch, 2).

    Note: the two transposes here each cost an extra HBM pass; callers that
    can keep activations feature-major should use dqn_network_forward_fm.
    """
    outT = dqn_network_forward_fm(jnp.transpose(x), params)
    return jnp.transpose(outT)


def init_params(key):
    """PyTorch nn.Linear default init: U(-1/sqrt(fan_in), 1/sqrt(fan_in)).

    Weights in PyTorch layout (out_features, in_features); biases as
    (out_features, 1) columns (lane-broadcast friendly in the kernel)."""
    def linear(key, fan_in, fan_out):
        kw, kb = jax.random.split(key)
        bound = 1.0 / math.sqrt(fan_in)
        w = jax.random.uniform(
            kw, (fan_out, fan_in), jnp.float32, minval=-bound, maxval=bound
        )
        b = jax.random.uniform(
            kb, (fan_out, 1), jnp.float32, minval=-bound, maxval=bound
        )
        return w, b

    k1, k2, k3 = jax.random.split(key, 3)
    w1, b1 = linear(k1, INPUT_DIMENSIONS, HIDDEN)
    w2, b2 = linear(k2, HIDDEN, HIDDEN)
    w3, b3 = linear(k3, HIDDEN, OUTPUT_DIMENSIONS)
    return {"w1": w1, "b1": b1, "w2": w2, "b2": b2, "w3": w3, "b3": b3}


def _reference_forward(x, p):
    h1 = jnp.maximum(x @ p["w1"].T + p["b1"].T, 0.0)
    h2 = jnp.maximum(h1 @ p["w2"].T + p["b2"].T, 0.0)
    return h2 @ p["w3"].T + p["b3"].T


if __name__ == "__main__":
    key = jax.random.PRNGKey(0)
    kp, kx1, kx2 = jax.random.split(key, 3)
    params = init_params(kp)

    # Small batch (typical DQN act() call) — single 128-lane padded tile.
    batch = 8
    x = jax.random.normal(kx1, (batch, INPUT_DIMENSIONS), jnp.float32)
    out = jax.block_until_ready(dqn_network_forward(x, params))
    ref = _reference_forward(x, params)
    assert out.shape == (batch, OUTPUT_DIMENSIONS)
    assert jnp.allclose(out, ref, atol=1e-5, rtol=1e-5)

    # Feature-major path (preferred: no wrapper transposes).
    out_fm = jax.block_until_ready(dqn_network_forward_fm(x.T, params))
    assert out_fm.shape == (OUTPUT_DIMENSIONS, batch)
    assert jnp.allclose(out_fm.T, ref, atol=1e-5, rtol=1e-5)

    # Batch larger than 256 lanes — pads 700 -> 768 (not 1024) and runs a
    # 2-step parallel grid (tb = 384) so both v7x TensorCores participate.
    batch2 = 700
    x2 = jax.random.normal(kx2, (batch2, INPUT_DIMENSIONS), jnp.float32)
    out2 = jax.block_until_ready(dqn_network_forward(x2, params))
    ref2 = _reference_forward(x2, params)
    assert out2.shape == (batch2, OUTPUT_DIMENSIONS)
    assert jnp.allclose(out2, ref2, atol=1e-5, rtol=1e-5)

    print("KERNEL_OK")
</pallas_src>

<mosaic_0001>
module attributes {stable_mosaic.version = 11 : i64} {
  func.func @_mlp_kernel(%arg0: i32, %arg1: memref<4x128xf32, #tpu.memory_space<vmem>>, %arg2: memref<12x4xf32, #tpu.memory_space<vmem>>, %arg3: memref<12x1xf32, #tpu.memory_space<vmem>>, %arg4: memref<12x12xf32, #tpu.memory_space<vmem>>, %arg5: memref<12x1xf32, #tpu.memory_space<vmem>>, %arg6: memref<2x12xf32, #tpu.memory_space<vmem>>, %arg7: memref<2x1xf32, #tpu.memory_space<vmem>>, %arg8: memref<2x128xf32, #tpu.memory_space<vmem>>) attributes {dimension_semantics = [#tpu.dimension_semantics<parallel>], iteration_bounds = array<i64: 1>, scalar_prefetch = 0 : i64, scratch_operands = 0 : i64, tpu.core_type = #tpu.core_type<tc>, window_params = [{transform_indices = @transform_0, window_bounds = array<i64: 4, 128>}, {pipeline_mode = #tpu.pipeline_mode<synchronous>, transform_indices = @transform_1, window_bounds = array<i64: 12, 4>}, {pipeline_mode = #tpu.pipeline_mode<synchronous>, transform_indices = @transform_2, window_bounds = array<i64: 12, 1>}, {pipeline_mode = #tpu.pipeline_mode<synchronous>, transform_indices = @transform_3, window_bounds = array<i64: 12, 12>}, {pipeline_mode = #tpu.pipeline_mode<synchronous>, transform_indices = @transform_4, window_bounds = array<i64: 12, 1>}, {pipeline_mode = #tpu.pipeline_mode<synchronous>, transform_indices = @transform_5, window_bounds = array<i64: 2, 12>}, {pipeline_mode = #tpu.pipeline_mode<synchronous>, transform_indices = @transform_6, window_bounds = array<i64: 2, 1>}, {transform_indices = @transform_7, window_bounds = array<i64: 2, 128>}]} {
    %c0 = arith.constant 0 : index
    %c0_0 = arith.constant 0 : index
    %0 = vector.load %arg1[%c0, %c0_0] : memref<4x128xf32, #tpu.memory_space<vmem>>, vector<4x128xf32>
    %c0_1 = arith.constant 0 : index
    %c0_2 = arith.constant 0 : index
    %1 = vector.load %arg2[%c0_1, %c0_2] : memref<12x4xf32, #tpu.memory_space<vmem>>, vector<12x4xf32>
    %cst = arith.constant dense<0.000000e+00> : vector<12x128xf32>
    %2 = tpu.matmul %1, %0, %cst {dimension_numbers = #tpu.dot_dimension_numbers<[1], [0], [0], [1], [0, 0, 1, 1], [], []>} : vector<12x4xf32>, vector<4x128xf32>, vector<12x128xf32> -> vector<12x128xf32>
    %c0_3 = arith.constant 0 : index
    %c0_4 = arith.constant 0 : index
    %3 = vector.load %arg3[%c0_3, %c0_4] : memref<12x1xf32, #tpu.memory_space<vmem>>, vector<12x1xf32>
    %4 = vector.broadcast %3 : vector<12x1xf32> to vector<12x128xf32>
    %5 = arith.addf %2, %4 : vector<12x128xf32>
    %cst_5 = arith.constant 0.000000e+00 : f32
    %6 = vector.broadcast %cst_5 : f32 to vector<12x128xf32>
    %7 = arith.maximumf %5, %6 : vector<12x128xf32>
    %c0_6 = arith.constant 0 : index
    %c0_7 = arith.constant 0 : index
    %8 = vector.load %arg4[%c0_6, %c0_7] : memref<12x12xf32, #tpu.memory_space<vmem>>, vector<12x12xf32>
    %cst_8 = arith.constant dense<0.000000e+00> : vector<12x128xf32>
    %9 = tpu.matmul %8, %7, %cst_8 {dimension_numbers = #tpu.dot_dimension_numbers<[1], [0], [0], [1], [0, 0, 1, 1], [], []>} : vector<12x12xf32>, vector<12x128xf32>, vector<12x128xf32> -> vector<12x128xf32>
    %c0_9 = arith.constant 0 : index
    %c0_10 = arith.constant 0 : index
    %10 = vector.load %arg5[%c0_9, %c0_10] : memref<12x1xf32, #tpu.memory_space<vmem>>, vector<12x1xf32>
    %11 = vector.broadcast %10 : vector<12x1xf32> to vector<12x128xf32>
    %12 = arith.addf %9, %11 : vector<12x128xf32>
    %cst_11 = arith.constant 0.000000e+00 : f32
    %13 = vector.broadcast %cst_11 : f32 to vector<12x128xf32>
    %14 = arith.maximumf %12, %13 : vector<12x128xf32>
    %c0_12 = arith.constant 0 : index
    %c0_13 = arith.constant 0 : index
    %15 = vector.load %arg6[%c0_12, %c0_13] : memref<2x12xf32, #tpu.memory_space<vmem>>, vector<2x12xf32>
    %cst_14 = arith.constant dense<0.000000e+00> : vector<2x128xf32>
    %16 = tpu.matmul %15, %14, %cst_14 {dimension_numbers = #tpu.dot_dimension_numbers<[1], [0], [0], [1], [0, 0, 1, 1], [], []>} : vector<2x12xf32>, vector<12x128xf32>, vector<2x128xf32> -> vector<2x128xf32>
    %c0_15 = arith.constant 0 : index
    %c0_16 = arith.constant 0 : index
    %17 = vector.load %arg7[%c0_15, %c0_16] : memref<2x1xf32, #tpu.memory_space<vmem>>, vector<2x1xf32>
    %18 = vector.broadcast %17 : vector<2x1xf32> to vector<2x128xf32>
    %19 = arith.addf %16, %18 : vector<2x128xf32>
    %c0_17 = arith.constant 0 : index
    %c0_18 = arith.constant 0 : index
    %20 = vector.load %arg8[%c0_17, %c0_18] : memref<2x128xf32, #tpu.memory_space<vmem>>, vector<2x128xf32>
    tpu.vector_store %arg8[%c0_17, %c0_18], %19 {strides = array<i32>} : memref<2x128xf32, #tpu.memory_space<vmem>>, vector<2x128xf32>,
    return
  }
  func.func @transform_0(%arg0: i32) -> (i32, i32) {
    %c0_i32 = arith.constant 0 : i32
    %c0_i32_0 = arith.constant 0 : i32
    return %c0_i32, %arg0 : i32, i32
  }
  func.func @transform_1(%arg0: i32) -> (i32, i32) {
    %c0_i32 = arith.constant 0 : i32
    %c0_i32_0 = arith.constant 0 : i32
    %c0_i32_1 = arith.constant 0 : i32
    return %c0_i32, %c0_i32_0 : i32, i32
  }
  func.func @transform_2(%arg0: i32) -> (i32, i32) {
    %c0_i32 = arith.constant 0 : i32
    %c0_i32_0 = arith.constant 0 : i32
    %c0_i32_1 = arith.constant 0 : i32
    return %c0_i32, %c0_i32_0 : i32, i32
  }
  func.func @transform_3(%arg0: i32) -> (i32, i32) {
    %c0_i32 = arith.constant 0 : i32
    %c0_i32_0 = arith.constant 0 : i32
    %c0_i32_1 = arith.constant 0 : i32
    return %c0_i32, %c0_i32_0 : i32, i32
  }
  func.func @transform_4(%arg0: i32) -> (i32, i32) {
    %c0_i32 = arith.constant 0 : i32
    %c0_i32_0 = arith.constant 0 : i32
    %c0_i32_1 = arith.constant 0 : i32
    return %c0_i32, %c0_i32_0 : i32, i32
  }
  func.func @transform_5(%arg0: i32) -> (i32, i32) {
    %c0_i32 = arith.constant 0 : i32
    %c0_i32_0 = arith.constant 0 : i32
    %c0_i32_1 = arith.constant 0 : i32
    return %c0_i32, %c0_i32_0 : i32, i32
  }
  func.func @transform_6(%arg0: i32) -> (i32, i32) {
    %c0_i32 = arith.constant 0 : i32
    %c0_i32_0 = arith.constant 0 : i32
    %c0_i32_1 = arith.constant 0 : i32
    return %c0_i32, %c0_i32_0 : i32, i32
  }
  func.func @transform_7(%arg0: i32) -> (i32, i32) {
    %c0_i32 = arith.constant 0 : i32
    %c0_i32_0 = arith.constant 0 : i32
    return %c0_i32, %arg0 : i32, i32
  }
}

</mosaic_0001>

<bundles_post_ra>
// kernel: dqn_network_forward_fm.1
= control target key start
LH: loop header
LB: loop body
LE: loop exit
PB: predicated region body
PF: predicated region fallthrough
CT: control target
= control target key end

     0   :  { %vm49_vm0 = vcmask 1043456   ;;  %vm42_vm1 = vcmask 31744   ;;  %v408_v4 = vmov 0   ;;  %s515_s0 = inlined_call_operand.vmem [shape: f32[4,128], index: 0, kind: input, shape index: {}]   ;;  %s516_s1 = inlined_call_operand.vmem [shape: f32[12,4], index: 1, kind: input, shape index: {}]   ;;  %s517_s2 = inlined_call_operand.vmem [shape: f32[12,1], index: 2, kind: input, shape index: {}]   ;;  %s518_s3 = inlined_call_operand.vmem [shape: f32[12,12], index: 3, kind: input, shape index: {}]   ;;  %s519_s4 = inlined_call_operand.vmem [shape: f32[12,1], index: 4, kind: input, shape index: {}]   ;;  %s520_s5 = inlined_call_operand.vmem [shape: f32[2,12], index: 5, kind: input, shape index: {}]   ;;  %s521_s6 = inlined_call_operand.vmem [shape: f32[2,1], index: 6, kind: input, shape index: {}]   ;;  %s522_s7 = inlined_call_operand.hbm [shape: f32[2,128], index: 7, kind: output, shape index: {}]  }
   0x1   :  { %v27_v0 = vld [vmem:[%s515_s0] sm:$0xf]  ;;  %v29_v2 = vld [vmem:[%s516_s1 + $0x8] sm:$0xf]  ;;  %382 = vset.pattern.permute.xlu0 %v408_v4 }
   0x2   :  { %v28_v1 = vld [vmem:[%s516_s1] sm:$0xff]  ;;  %347 = vmatprep.subr.msk.mxu0 %vm49_vm0, %v27_v0 }
   0x3   :  { %349 = vmatprep.mubr.msk.f32.mxu0 %vm42_vm1, %v28_v1  ;;  %v30_v3 = vld [vmem:[%s517_s2] sm:$0xff]  ;;  %348 = vmatpush3.msk.msra.mxu0 %vm49_vm0, %v27_v0 }
   0x4   :  { %12 = vsyncpa [#allocation3], 0  ;;  %350 = vmatmul.mubr.msk.f32.vlgmr.msra.gmra.mrb[0].mxu0 %vm42_vm1, %v29_v2  ;;  %34 = vperm.xlu0 %382, %v30_v3   ;;  %v31_v5 = vld [vmem:[%s517_s2 + $0x8] sm:$0xf]  ;;  %v232_v6 = vld [vmem:[%s521_s6] sm:$0x3] }
   0x5   :  { %383 = vset.pattern.permute.xlu1 %v408_v4  ;;  %v130_v7 = vld [vmem:[%s518_s3] sm:$0xff]  ;;  %vm144_vm2 = vcmask 97280   ;;  %v133_v9 = vld [vmem:[%s519_s4 + $0x8] sm:$0xf]  ;;  %vm409_vm3 = vmmov 1   ;;  %v410_v21 = vmov 0.0|0.0  }
   0x6   :  { %356 = vmatprep.mubr.msk.f32.mxu1 %vm144_vm2, %v130_v7  ;;  %v132_v8 = vld [vmem:[%s519_s4] sm:$0xff]  ;;  %vm485_vm4 = vmpackc.low %vm49_vm0, %vm409_vm3  ;;  %v131_v20 = vld [vmem:[%s518_s3 + $0x8] sm:$0xf]  ;;  %372 = vmatprep.subr.bf16.mxu0 %v410_v21  ;;  %vm411_vm5 = vmmov 0   ;;  %v412_v22 = vmov 0.0   ;;  %s413_s17 = smov [#allocation2]  }
   0x7   :  { %136 = vperm.xlu1 %383, %v132_v8   ;;  %363 = vmatprep.mubr.msk.f32.mxu0 %vm411_vm5, %v412_v22  ;;  %v231_v32 = vld [vmem:[%s520_s5] sm:$0x3]  ;;  %s321_s18 = sshll.u32 %s413_s17, 4  ;;  %s322_s18 = int_to_ptr.vmem [resolvable:$true] %s321_s18 }
   0x8   :  { %39 = vperm.xlu0 %382, %v31_v5   ;;  %s384_s19 = scalar_lea.vmem %s322_s18, 32  ;;  %p389_p1 = scmp.lt.s32.totalorder %s322_s18, %s322_s18 }
   0x9   :  { %p385_p0 = scmp.ne.s32.totalorder %s322_s18, %s384_s19  ;;  %p390_p2 = scmp.lt.s32.totalorder %s384_s19, %s384_s19 }
   0xb   :  { %141 = vperm.xlu1 %383, %v133_v9   ;;  %p391_p3 = por %p390_p2, %p389_p1 }
   0xc   :  { %235 = vperm.xlu0 %382, %v232_v6  }
   0xd   :  { %p392_p4 = pnand %p391_p3, %p385_p0 }
  0x83   :  { %v35_v10 = vpop.permute.xlu0 %34 }
  0x86   :  { %v137_v23 = vpop.permute.xlu1 %136 }
  0x87   :  { %v40_v11 = vpop.permute.xlu0 %39 }
  0x8a   :  { %v142_v24 = vpop.permute.xlu1 %141 }
  0x8b   :  { %v236_v33 = vpop.permute.xlu0 %235 }
  0xd7   :  { %v351_v12 = vpop.f32.mrb[0].mxu0 }
  0xd8   :  { %v125_v13 = vadd.f32 %v351_v12, %v40_v11  ;;  %v119_v14 = vpop.f32.mrb[1].mxu0 }
  0xd9   :  { %v120_v15 = vadd.f32 %v119_v14, %v35_v10 }
  0xda   :  { %v129_v16 = vmax.f32 %v125_v13, 0.0 }
  0xdb   :  { %v128_v17 = vmax.f32 %v120_v15, 0.0 }
  0xdd   :  { %v366_v19 = vpack.c.bf16 %v129_v16, %v128_v17 }
  0xdf   :  { %368 = vmatprep.subr.msk.bf16.mxu1 %vm485_vm4, %v366_v19 }
  0xe0   :  { %371 = vmatpush3.bf16.msk.msra.mxu1 %vm485_vm4, %v366_v19 }
  0xe3   :  { %357 = vmatmul.mubr.msk.f32.vlgmr.msra.gmra.mrb[0].mxu1 %vm144_vm2, %v131_v20 }
 0x1b6   :  { %v358_v25 = vpop.f32.mrb[0].mxu1 }
 0x1b7   :  { %v226_v26 = vadd.f32 %v358_v25, %v142_v24  ;;  %v220_v27 = vpop.f32.mrb[1].mxu1 }
 0x1b8   :  { %v221_v28 = vadd.f32 %v220_v27, %v137_v23 }
 0x1b9   :  { %v230_v29 = vmax.f32 %v226_v26, 0.0 }
 0x1ba   :  { %v229_v30 = vmax.f32 %v221_v28, 0.0 }
 0x1bc   :  { %v373_v31 = vpack.c.bf16 %v230_v29, %v229_v30 }
 0x1be   :  { %375 = vmatpush3.bf16.msk.msra.mxu0 %vm485_vm4, %v373_v31 }
 0x1c1   :  { %364 = vmatmul.mubr.msk.f32.vlgmr.msra.gmra.mrb[2].mxu0 %vm144_vm2, %v231_v32 }
 0x294   :  { %v310_v34 = vpop.f32.mrb[2].mxu0 }
 0x295   :  { %v311_v35 = vadd.f32 %v310_v34, %v236_v33  ;;  %v365_v36 = vpop.f32.mrb[3].mxu0 }
 0x297   :  { %314 = vst [vmem:[#allocation2] sm:$0x3] %v311_v35 }
 0x298   :  { %395 = shalt.err (!%p392_p4)
}
 0x299   :  { %s396_s5 = scalar_lea.hbm %s522_s7, 32 }
 0x29a   :  { %p397_p5 = scmp.ne.s32.totalorder %s522_s7, %s396_s5  ;;  %p400_p6 = scmp.lt.u32.totalorder %s396_s5, %s522_s7 }
 0x29c   :  { %p402_p7 = pnand %p400_p6, %p397_p5 }
 0x29e   :  { %405 = shalt.err (!%p402_p7)
}
 0x29f   :  { %324 = dma.vmem_to_hbm [thread:$0]  %s322_s18, 32, %s522_s7, [#allocation3]  }
 0x2a0   :  { %406 = dma.done.wait [#allocation3], 32  }
 0x2a1   :  { %407 = vsyncadd [#allocation3], 4294967264 }
 0x2a2   :  { %328 = vsyncpa [#allocation3], 1 }

</bundles_post_ra>
